<compile_context>
chip_gen: v7x
topology: tpu7x:2x2x1
jax: 0.10.0
libtpu: 0.0.40
codegen_flags: <defaults>
</compile_context>

<pallas_src>
import functools
import math

import jax
import jax.numpy as jnp
import numpy as np
from jax import lax
from jax.experimental import pallas as pl
from jax.experimental.pallas import tpu as pltpu


def _round_up(x, m):
    return (x + m - 1) // m * m


def _cdiv(a, b):
    return -(-a // b)


def _tpu_vmem_plan():
    """Return (per-step VMEM budget, vmem_limit_bytes, TensorCores per chip)."""
    cap = None
    try:
        info = pltpu.get_tpu_info()
        cap = getattr(info, "vmem_capacity_bytes", None)
    except Exception:
        cap = None
    if cap is None:
        cap = 64 * 1024 * 1024                 # conservative (v7x-sized) fallback
    if cap <= 64 * 1024 * 1024:
        # v7x-class: 64 MiB physical VMEM per TC, 2 TCs/chip.  Leave headroom
        # for double-buffered blocks and compiler scratch.
        return 28 * 1024 * 1024, 48 * 1024 * 1024, 2
    # v5e / v6e: 128 MiB physical VMEM, single TensorCore -> use big blocks.
    return 80 * 1024 * 1024, 100 * 1024 * 1024, 1


def _plan_batch_tiling(b, n_pad, d_pad, h_pad, itemsize, budget, num_tc):
    """Pick rows-per-step (tb), padded batch (bp) and grid length."""
    per_row = (
        2 * n_pad * d_pad * itemsize        # pipelined input block (double-buffered)
        + n_pad * d_pad * itemsize          # masked copy, native dtype
        + n_pad * h_pad * 4                 # hidden activations, f32
        + n_pad * d_pad * 4                 # attn*x intermediate before reduce, f32
        + 8 * (d_pad + n_pad)               # double-buffered output rows
    )
    fixed = 2 * d_pad * h_pad * itemsize + 8 * h_pad * 4 + 2 * 1024 * 1024
    avail = budget - fixed
    if avail < 8 * per_row:
        raise ValueError(
            "StucturedSelfAttention kernel: a minimal 8-row block "
            f"(~{8 * per_row + fixed} B) exceeds the VMEM budget ({budget} B). "
            "Reduce seq_len*input_size or add an inner sequence grid axis.")
    tb = min((avail // per_row) // 8 * 8, 1024)
    bp8 = _round_up(b, 8)
    tb = min(tb, bp8)
    if num_tc >= 2 and bp8 >= 16:
        # Split across the two TensorCores with an even number of grid steps.
        grid = max(2, 2 * _cdiv(bp8, 2 * tb))
        tb = _round_up(_cdiv(bp8, grid), 8)
        bp = grid * tb
    else:
        # Single-TC chips: the grid is a serial loop, so prefer one big block.
        bp = _round_up(b, tb)
        grid = bp // tb
    return tb, bp, grid


def _structured_self_attn_kernel(lens_ref, x_ref, w1_ref, b1_ref, w2_ref,
                                 b2_ref, enc_ref, attn_ref, *,
                                 n_valid, tanh_bf16):
    """Processes TB batch rows per grid step.

    lens_ref : VMEM (TB, 1)  int32    sequence lengths
    x_ref    : VMEM (TB, Np, Dp)      inputs (native dtype, zero padded)
    w1_ref   : VMEM (Dp, Hp)          first Linear weight, input dtype
    b1_ref   : VMEM (1, Hp)  f32      first Linear bias
    w2_ref   : VMEM (1, Hp)  f32      second Linear weight (row)
    b2_ref   : SMEM (1, 1)   f32      second Linear bias (cancels in softmax)
    enc_ref  : VMEM (TB, Dp)          encoded output (input dtype)
    attn_ref : VMEM (TB, Np) f32      attention weights output
    """
    x = x_ref[...]                                      # (TB, Np, Dp) native dtype
    tb, n_pad, d_pad = x.shape

    # Length mask applied to the *inputs* (PyTorch: inputs * mask).  0/1
    # multiply is exact in any float dtype, so keep the MXU operand narrow.
    pos = lax.broadcasted_iota(jnp.int32, (tb, n_pad), 1)
    valid = (pos < lens_ref[...]).astype(x.dtype)       # (TB, Np)
    xm = x * valid[:, :, None]                          # (TB, Np, Dp)

    # fc: Linear(d -> h) -> Tanh -> Linear(h -> 1).  Np % 8 == 0 and
    # Dp % 128 == 0, so this reshape is a free view (no VMEM relayout).
    xf = xm.reshape(tb * n_pad, d_pad)
    pre = jnp.dot(xf, w1_ref[...], preferred_element_type=jnp.float32)
    pre = pre + b1_ref[...]                             # (TB*Np, Hp) f32
    if tanh_bf16:
        # bf16 EUP tanh (~2x on v6e/v7x); only used when inputs are bf16.
        hidden = jnp.tanh(pre.astype(jnp.bfloat16)).astype(jnp.float32)
    else:
        hidden = jnp.tanh(pre)
    hidden = hidden.reshape(tb, n_pad, -1)              # free view (Hp % 128 == 0)

    # scores = hidden @ W2^T + b2, as a VPU multiply + XLU lane reduce.
    scores = jnp.sum(hidden * w2_ref[...][None, :, :], axis=-1) + b2_ref[0, 0]

    # Softmax over the *original* n positions.  Positions beyond input_lens but
    # below n still participate (matches torch); wrapper-padded seq rows are
    # excluded with a large negative score.
    if n_pad != n_valid:
        scores = jnp.where(pos < n_valid, scores, -1e30)
    m = jnp.max(scores, axis=-1, keepdims=True)
    e = jnp.exp(scores - m)
    denom = jnp.sum(e, axis=-1, keepdims=True)
    attn = e * pl.reciprocal(denom, approx=True)        # EUP reciprocal (free slot)

    # encoded = attn_weights.bmm(masked_inputs): f32 elementwise accumulate.
    enc = jnp.sum(attn[:, :, None] * xm.astype(jnp.float32), axis=1)  # (TB, Dp)

    enc_ref[...] = enc.astype(enc_ref.dtype)
    attn_ref[...] = attn.astype(attn_ref.dtype)


def structured_self_attention(inputs, input_lens, fc1_w, fc1_b, fc2_w, fc2_b):
    """Pallas equivalent of StucturedSelfAttention.forward.

    inputs     : (b, n, d)   any float dtype (kept native for DMA / MXU)
    input_lens : (b,) int or None
    fc1_w      : (h, d)   PyTorch nn.Linear weight
    fc1_b      : (h,)
    fc2_w      : (1, h)
    fc2_b      : (1,)
    returns    : encoded (b, 1, d) in input dtype, attn_weights (b, 1, n) f32
    """
    b, n, d = inputs.shape
    h = fc1_w.shape[0]
    in_dtype = inputs.dtype
    itemsize = jnp.dtype(in_dtype).itemsize

    budget, vmem_limit, num_tc = _tpu_vmem_plan()

    # Lane/sublane alignment: last dims padded to multiples of 128, second-minor
    # (seq) to the packed sublane multiple for the dtype, so reshapes are free
    # views and stores are lane-dense.  Zero padding is semantically inert.
    d_pad = _round_up(d, 128)
    h_pad = _round_up(h, 128)
    sub = 8 * max(1, 4 // itemsize)
    n_pad = _round_up(n, sub)

    tb, bp, grid = _plan_batch_tiling(b, n_pad, d_pad, h_pad, itemsize,
                                      budget, num_tc)

    if input_lens is None:
        lens = jnp.full((b,), n, dtype=jnp.int32)
    else:
        lens = input_lens.astype(jnp.int32)
    if bp != b:
        lens = jnp.pad(lens, (0, bp - b))               # padded rows -> len 0
    lens2d = lens.reshape(bp, 1)

    x = inputs
    if (bp, n_pad, d_pad) != (b, n, d):
        x = jnp.pad(x, ((0, bp - b), (0, n_pad - n), (0, d_pad - d)))

    # First Linear as (d, h) so the kernel computes x @ W; MXU operands stay in
    # the input dtype (f32 accumulation via preferred_element_type); the biases
    # and the second Linear row stay f32.
    w1 = jnp.pad(fc1_w.T, ((0, d_pad - d), (0, h_pad - h))).astype(in_dtype)
    b1 = jnp.pad(fc1_b.astype(jnp.float32), (0, h_pad - h)).reshape(1, h_pad)
    w2 = jnp.pad(fc2_w.reshape(-1).astype(jnp.float32),
                 (0, h_pad - h)).reshape(1, h_pad)
    b2 = jnp.asarray(fc2_b, jnp.float32).reshape(1, 1)

    kernel = functools.partial(
        _structured_self_attn_kernel,
        n_valid=n,
        tanh_bf16=(in_dtype == jnp.bfloat16),
    )

    enc, attn = pl.pallas_call(
        kernel,
        out_shape=(
            jax.ShapeDtypeStruct((bp, d_pad), in_dtype),
            jax.ShapeDtypeStruct((bp, n_pad), jnp.float32),
        ),
        grid=(grid,),
        in_specs=[
            pl.BlockSpec((tb, 1), lambda i: (i, 0)),               # lens
            pl.BlockSpec((tb, n_pad, d_pad), lambda i: (i, 0, 0)), # inputs
            pl.BlockSpec((d_pad, h_pad), lambda i: (0, 0)),        # W1 (resident)
            pl.BlockSpec((1, h_pad), lambda i: (0, 0)),            # b1
            pl.BlockSpec((1, h_pad), lambda i: (0, 0)),            # W2 row
            pl.BlockSpec(memory_space=pltpu.MemorySpace.SMEM),     # b2 scalar
        ],
        out_specs=[
            pl.BlockSpec((tb, d_pad), lambda i: (i, 0)),           # encoded
            pl.BlockSpec((tb, n_pad), lambda i: (i, 0)),           # attn weights
        ],
        compiler_params=pltpu.CompilerParams(
            dimension_semantics=("parallel",),
            vmem_limit_bytes=vmem_limit,
        ),
    )(lens2d, x, w1, b1, w2, b2)

    enc = enc[:b, :d].reshape(b, 1, d)
    attn = attn[:b, :n].reshape(b, 1, n)
    return enc, attn


def _reference(inputs, input_lens, fc1_w, fc1_b, fc2_w, fc2_b):
    """Pure-JAX reference mirroring the PyTorch forward semantics (f32)."""
    b, n, d = inputs.shape
    x = inputs.astype(jnp.float32)
    if input_lens is not None:
        mask = (jnp.arange(n)[None, :] < input_lens[:, None]).astype(jnp.float32)
        x = x * mask[:, :, None]
    hidden = jnp.tanh(x @ fc1_w.T.astype(jnp.float32) + fc1_b)   # (b, n, h)
    scores = hidden @ fc2_w.reshape(-1) + fc2_b.reshape(())      # (b, n)
    w = jax.nn.softmax(scores, axis=1)                           # softmax over seq
    enc = jnp.einsum('bn,bnd->bd', w, x)
    return enc[:, None, :], w[:, None, :]


# TODO(synk): encode_list() (a separate helper method, not forward) is not ported.

if __name__ == "__main__":
    b, n, d, h = 2, 8, 32, 64
    key = jax.random.PRNGKey(0)
    k_x, k_w1, k_b1, k_w2, k_b2 = jax.random.split(key, 5)

    inputs = jax.random.normal(k_x, (b, n, d), dtype=jnp.float32)
    # PyTorch nn.Linear default init: U(-1/sqrt(fan_in), 1/sqrt(fan_in))
    s1 = 1.0 / math.sqrt(d)
    fc1_w = jax.random.uniform(k_w1, (h, d), minval=-s1, maxval=s1, dtype=jnp.float32)
    fc1_b = jax.random.uniform(k_b1, (h,), minval=-s1, maxval=s1, dtype=jnp.float32)
    s2 = 1.0 / math.sqrt(h)
    fc2_w = jax.random.uniform(k_w2, (1, h), minval=-s2, maxval=s2, dtype=jnp.float32)
    fc2_b = jax.random.uniform(k_b2, (1,), minval=-s2, maxval=s2, dtype=jnp.float32)
    input_lens = jnp.array([8, 5], dtype=jnp.int32)

    # With lengths (masked inputs).
    enc, attn = structured_self_attention(inputs, input_lens,
                                          fc1_w, fc1_b, fc2_w, fc2_b)
    jax.block_until_ready((enc, attn))
    enc_ref, attn_ref = _reference(inputs, input_lens, fc1_w, fc1_b, fc2_w, fc2_b)
    # Tolerance accommodates the EUP approximate reciprocal in the softmax.
    np.testing.assert_allclose(np.asarray(enc), np.asarray(enc_ref),
                               rtol=1e-3, atol=1e-3)
    np.testing.assert_allclose(np.asarray(attn), np.asarray(attn_ref),
                               rtol=1e-3, atol=1e-3)
    assert enc.shape == (b, 1, d) and attn.shape == (b, 1, n)

    # Without lengths (no masking path).
    enc2, attn2 = structured_self_attention(inputs, None,
                                            fc1_w, fc1_b, fc2_w, fc2_b)
    jax.block_until_ready((enc2, attn2))
    enc2_ref, attn2_ref = _reference(inputs, None, fc1_w, fc1_b, fc2_w, fc2_b)
    np.testing.assert_allclose(np.asarray(enc2), np.asarray(enc2_ref),
                               rtol=1e-3, atol=1e-3)
    np.testing.assert_allclose(np.asarray(attn2), np.asarray(attn2_ref),
                               rtol=1e-3, atol=1e-3)

    print("KERNEL_OK")
</pallas_src>

<mosaic_0001>
module attributes {stable_mosaic.version = 11 : i64} {
  func.func @_structured_self_attn_kernel(%arg0: i32, %arg1: memref<8x1xi32, #tpu.memory_space<vmem>>, %arg2: memref<8x8x128xf32, #tpu.memory_space<vmem>>, %arg3: memref<128x128xf32, #tpu.memory_space<vmem>>, %arg4: memref<1x128xf32, #tpu.memory_space<vmem>>, %arg5: memref<1x128xf32, #tpu.memory_space<vmem>>, %arg6: memref<1x1xf32, #tpu.memory_space<smem>>, %arg7: memref<8x128xf32, #tpu.memory_space<vmem>>, %arg8: memref<8x8xf32, #tpu.memory_space<vmem>>) attributes {dimension_semantics = [#tpu.dimension_semantics<parallel>], iteration_bounds = array<i64: 1>, scalar_prefetch = 0 : i64, scratch_operands = 0 : i64, tpu.core_type = #tpu.core_type<tc>, window_params = [{transform_indices = @transform_0, window_bounds = array<i64: 8, 1>}, {transform_indices = @transform_1, window_bounds = array<i64: 8, 8, 128>}, {pipeline_mode = #tpu.pipeline_mode<synchronous>, transform_indices = @transform_2, window_bounds = array<i64: 128, 128>}, {pipeline_mode = #tpu.pipeline_mode<synchronous>, transform_indices = @transform_3, window_bounds = array<i64: 1, 128>}, {pipeline_mode = #tpu.pipeline_mode<synchronous>, transform_indices = @transform_4, window_bounds = array<i64: 1, 128>}, {transform_indices = @transform_5, window_bounds = array<i64: 1, 1>}, {transform_indices = @transform_6, window_bounds = array<i64: 8, 128>}, {transform_indices = @transform_7, window_bounds = array<i64: 8, 8>}]} {
    %c0 = arith.constant 0 : index
    %c0_0 = arith.constant 0 : index
    %c0_1 = arith.constant 0 : index
    %0 = vector.load %arg2[%c0, %c0_0, %c0_1] : memref<8x8x128xf32, #tpu.memory_space<vmem>>, vector<8x8x128xf32>
    %1 = tpu.iota {dimensions = array<i32: 1>} : vector<8x8xi32>
    %c0_2 = arith.constant 0 : index
    %c0_3 = arith.constant 0 : index
    %2 = vector.load %arg1[%c0_2, %c0_3] : memref<8x1xi32, #tpu.memory_space<vmem>>, vector<8x1xi32>
    %3 = vector.broadcast %2 : vector<8x1xi32> to vector<8x8xi32>
    %4 = arith.cmpi slt, %1, %3 : vector<8x8xi32>
    %5 = arith.extui %4 : vector<8x8xi1> to vector<8x8xi32>
    %6 = arith.sitofp %5 : vector<8x8xi32> to vector<8x8xf32>
    %7 = vector.shape_cast %6 : vector<8x8xf32> to vector<8x8x1xf32>
    %8 = vector.broadcast %7 : vector<8x8x1xf32> to vector<8x8x128xf32>
    %9 = arith.mulf %0, %8 : vector<8x8x128xf32>
    %10 = vector.shape_cast %9 : vector<8x8x128xf32> to vector<64x128xf32>
    %c0_4 = arith.constant 0 : index
    %c0_5 = arith.constant 0 : index
    %11 = vector.load %arg3[%c0_4, %c0_5] : memref<128x128xf32, #tpu.memory_space<vmem>>, vector<128x128xf32>
    %cst = arith.constant dense<0.000000e+00> : vector<64x128xf32>
    %12 = tpu.matmul %10, %11, %cst {dimension_numbers = #tpu.dot_dimension_numbers<[1], [0], [0], [1], [0, 0, 1, 1], [], []>} : vector<64x128xf32>, vector<128x128xf32>, vector<64x128xf32> -> vector<64x128xf32>
    %c0_6 = arith.constant 0 : index
    %c0_7 = arith.constant 0 : index
    %13 = vector.load %arg4[%c0_6, %c0_7] : memref<1x128xf32, #tpu.memory_space<vmem>>, vector<1x128xf32>
    %14 = vector.broadcast %13 : vector<1x128xf32> to vector<64x128xf32>
    %15 = arith.addf %12, %14 : vector<64x128xf32>
    %16 = math.tanh %15 : vector<64x128xf32>
    %17 = vector.shape_cast %16 : vector<64x128xf32> to vector<8x8x128xf32>
    %c0_8 = arith.constant 0 : index
    %c0_9 = arith.constant 0 : index
    %18 = vector.load %arg5[%c0_8, %c0_9] : memref<1x128xf32, #tpu.memory_space<vmem>>, vector<1x128xf32>
    %19 = vector.shape_cast %18 : vector<1x128xf32> to vector<1x1x128xf32>
    %20 = vector.broadcast %19 : vector<1x1x128xf32> to vector<8x8x128xf32>
    %21 = arith.mulf %17, %20 : vector<8x8x128xf32>
    %cst_10 = arith.constant dense<0.000000e+00> : vector<8x8xf32>
    %22 = vector.multi_reduction <add>, %21, %cst_10 [2] : vector<8x8x128xf32> to vector<8x8xf32>
    %c0_11 = arith.constant 0 : index
    %c0_12 = arith.constant 0 : index
    %23 = memref.load %arg6[%c0_11, %c0_12] : memref<1x1xf32, #tpu.memory_space<smem>>
    %24 = vector.broadcast %23 : f32 to vector<8x8xf32>
    %25 = arith.addf %22, %24 : vector<8x8xf32>
    %cst_13 = arith.constant dense<0xFF800000> : vector<8xf32>
    %26 = vector.multi_reduction <maximumf>, %25, %cst_13 [1] : vector<8x8xf32> to vector<8xf32>
    %27 = vector.shape_cast %26 : vector<8xf32> to vector<8x1xf32>
    %28 = vector.broadcast %27 : vector<8x1xf32> to vector<8x8xf32>
    %29 = arith.subf %25, %28 : vector<8x8xf32>
    %30 = math.exp %29 : vector<8x8xf32>
    %cst_14 = arith.constant dense<0.000000e+00> : vector<8xf32>
    %31 = vector.multi_reduction <add>, %30, %cst_14 [1] : vector<8x8xf32> to vector<8xf32>
    %32 = vector.shape_cast %31 : vector<8xf32> to vector<8x1xf32>
    %33 = tpu.reciprocal %32 {approx = true} : vector<8x1xf32> -> vector<8x1xf32>
    %34 = vector.broadcast %33 : vector<8x1xf32> to vector<8x8xf32>
    %35 = arith.mulf %30, %34 : vector<8x8xf32>
    %36 = vector.shape_cast %35 : vector<8x8xf32> to vector<8x8x1xf32>
    %37 = vector.broadcast %36 : vector<8x8x1xf32> to vector<8x8x128xf32>
    %38 = arith.mulf %37, %9 : vector<8x8x128xf32>
    %cst_15 = arith.constant dense<0.000000e+00> : vector<8x128xf32>
    %39 = vector.multi_reduction <add>, %38, %cst_15 [1] : vector<8x8x128xf32> to vector<8x128xf32>
    %c0_16 = arith.constant 0 : index
    %c0_17 = arith.constant 0 : index
    %40 = vector.load %arg7[%c0_16, %c0_17] : memref<8x128xf32, #tpu.memory_space<vmem>>, vector<8x128xf32>
    tpu.vector_store %arg7[%c0_16, %c0_17], %39 {strides = array<i32>} : memref<8x128xf32, #tpu.memory_space<vmem>>, vector<8x128xf32>,
    %c0_18 = arith.constant 0 : index
    %c0_19 = arith.constant 0 : index
    %41 = vector.load %arg8[%c0_18, %c0_19] : memref<8x8xf32, #tpu.memory_space<vmem>>, vector<8x8xf32>
    tpu.vector_store %arg8[%c0_18, %c0_19], %35 {strides = array<i32>} : memref<8x8xf32, #tpu.memory_space<vmem>>, vector<8x8xf32>,
    return
  }
  func.func @transform_0(%arg0: i32) -> (i32, i32) {
    %c0_i32 = arith.constant 0 : i32
    %c0_i32_0 = arith.constant 0 : i32
    return %arg0, %c0_i32 : i32, i32
  }
  func.func @transform_1(%arg0: i32) -> (i32, i32, i32) {
    %c0_i32 = arith.constant 0 : i32
    %c0_i32_0 = arith.constant 0 : i32
    %c0_i32_1 = arith.constant 0 : i32
    return %arg0, %c0_i32, %c0_i32_0 : i32, i32, i32
  }
  func.func @transform_2(%arg0: i32) -> (i32, i32) {
    %c0_i32 = arith.constant 0 : i32
    %c0_i32_0 = arith.constant 0 : i32
    %c0_i32_1 = arith.constant 0 : i32
    return %c0_i32, %c0_i32_0 : i32, i32
  }
  func.func @transform_3(%arg0: i32) -> (i32, i32) {
    %c0_i32 = arith.constant 0 : i32
    %c0_i32_0 = arith.constant 0 : i32
    %c0_i32_1 = arith.constant 0 : i32
    return %c0_i32, %c0_i32_0 : i32, i32
  }
  func.func @transform_4(%arg0: i32) -> (i32, i32) {
    %c0_i32 = arith.constant 0 : i32
    %c0_i32_0 = arith.constant 0 : i32
    %c0_i32_1 = arith.constant 0 : i32
    return %c0_i32, %c0_i32_0 : i32, i32
  }
  func.func @transform_5(%arg0: i32) -> (i32, i32) {
    %c0_i32 = arith.constant 0 : i32
    %c0_i32_0 = arith.constant 0 : i32
    %c0_i32_1 = arith.constant 0 : i32
    return %c0_i32, %c0_i32_0 : i32, i32
  }
  func.func @transform_6(%arg0: i32) -> (i32, i32) {
    %c0_i32 = arith.constant 0 : i32
    %c0_i32_0 = arith.constant 0 : i32
    return %arg0, %c0_i32 : i32, i32
  }
  func.func @transform_7(%arg0: i32) -> (i32, i32) {
    %c0_i32 = arith.constant 0 : i32
    %c0_i32_0 = arith.constant 0 : i32
    return %arg0, %c0_i32 : i32, i32
  }
}

</mosaic_0001>

<bundles_post_ra>
// kernel: tpu_custom_call.1
= control target key start
LH: loop header
LB: loop body
LE: loop exit
PB: predicated region body
PF: predicated region fallthrough
CT: control target
= control target key end

     0   :  { %14 = vsyncpa [#allocation4], 0  ;;  %s1258_s0 = inlined_call_operand.vmem [shape: s32[8,1], index: 0, kind: input, shape index: {}]   ;;  %s1259_s1 = inlined_call_operand.hbm [shape: f32[8,8,128], index: 1, kind: input, shape index: {}]   ;;  %s1260_s2 = inlined_call_operand.hbm [shape: f32[128,128], index: 2, kind: input, shape index: {}]   ;;  %s1261_s3 = inlined_call_operand.vmem [shape: f32[1,128], index: 3, kind: input, shape index: {}]   ;;  %s1262_s4 = inlined_call_operand.vmem [shape: f32[1,128], index: 4, kind: input, shape index: {}]   ;;  %s1263_s5 = inlined_call_operand.<no memory space> [shape: f32[1,1], index: 5, kind: input, shape index: {}]   ;;  %s1264_s6 = inlined_call_operand.hbm [shape: f32[8,128], index: 6, kind: output, shape index: {0}]   ;;  %s1265_s7 = inlined_call_operand.hbm [shape: f32[8,8], index: 7, kind: output, shape index: {1}]  }
   0x1   :  { %15 = vsyncpa [#allocation7], 0 }
   0x2   :  { %16 = vsyncpa [#allocation5], 0 }
   0x3   :  { %17 = vsyncpa [#allocation10], 0  ;;  %s1006_s24 = smov [#allocation3]   ;;  %s910_s28 = scalar_lea.hbm %s1259_s1, 1024 }
   0x4   :  { %s25_s25 = sshll.u32 %s1006_s24, 4  ;;  %p911_p0 = scmp.ne.s32.totalorder %s1259_s1, %s910_s28  ;;  %s26_s25 = int_to_ptr.vmem [resolvable:$true] %s25_s25 }
   0x5   :  { %p914_p1 = scmp.lt.u32.totalorder %s910_s28, %s1259_s1 }
   0x7   :  { %p916_p2 = pnand %p914_p1, %p911_p0 }
   0x9   :  { %919 = shalt.err (!%p916_p2)
}
   0xa   :  { %s920_s10 = scalar_lea.vmem %s26_s25, 1024  ;;  %p925_p4 = scmp.lt.s32.totalorder %s26_s25, %s26_s25 }
   0xb   :  { %p921_p3 = scmp.ne.s32.totalorder %s26_s25, %s920_s10  ;;  %p926_p5 = scmp.lt.s32.totalorder %s920_s10, %s920_s10 }
   0xd   :  { %p927_p6 = por %p926_p5, %p925_p4 }
   0xf   :  { %p928_p7 = pnand %p927_p6, %p921_p3 }
  0x11   :  { %931 = shalt.err (!%p928_p7)
}
  0x12   :  { %s1007_s11 = smov 128   ;;  %s1008_s12 = smov 8  }
  0x13   :  { %31 = dma.hbm_to_vmem [thread:$0]  %s1259_s1, 1024, %s26_s25, [#allocation4], %s1007_s11, %s1007_s11, %s1008_s12  }
  0x14   :  { %s1009_s15 = smov [#allocation6]   ;;  %s932_s19 = scalar_lea.hbm %s1260_s2, 2048 }
  0x15   :  { %s37_s16 = sshll.u32 %s1009_s15, 4  ;;  %p933_p8 = scmp.ne.s32.totalorder %s1260_s2, %s932_s19  ;;  %s38_s16 = int_to_ptr.vmem [resolvable:$true] %s37_s16 }
  0x16   :  { %p936_p9 = scmp.lt.u32.totalorder %s932_s19, %s1260_s2 }
  0x18   :  { %p938_p10 = pnand %p936_p9, %p933_p8 }
  0x1a   :  { %941 = shalt.err (!%p938_p10)
}
  0x1b   :  { %s942_s24 = scalar_lea.vmem %s38_s16, 2048  ;;  %p947_p12 = scmp.lt.s32.totalorder %s38_s16, %s38_s16 }
  0x1c   :  { %p943_p11 = scmp.ne.s32.totalorder %s38_s16, %s942_s24  ;;  %p948_p13 = scmp.lt.s32.totalorder %s942_s24, %s942_s24 }
  0x1e   :  { %p949_p0 = por %p948_p13, %p947_p12 }
  0x20   :  { %p950_p1 = pnand %p949_p0, %p943_p11 }
  0x22   :  { %953 = shalt.err (!%p950_p1)
}
  0x23   :  { %43 = dma.hbm_to_vmem [thread:$0]  %s1260_s2, 2048, %s38_s16, [#allocation7], %s1007_s11, %s1007_s11, %s1008_s12  }
  0x24   :  { %998 = dma.done.wait [#allocation4], 1024  }
  0x25   :  { %999 = vsyncadd [#allocation4], 4294966272 }
  0x26   :  { %1000 = dma.done.wait [#allocation7], 2048  }
  0x27   :  { %1001 = vsyncadd [#allocation7], 4294965248  ;;  %v1010_v0 = vmov 0   ;;  %v66_v1 = vld [vmem:[%s1258_s0] sm:$0xff]  ;;  %v138_v3 = vld [vmem:[#allocation6 + $0x8] sm:$0xff]  ;;  %v64_v26 = vlaneseq  ;;  %v1011_v32 = vmov 0.0  }
  0x28   :  { %874 = vset.pattern.permute.xlu0 %v1010_v0  ;;  %875 = vset.pattern.permute.xlu1 %v1010_v0  ;;  %v137_v2 = vld [vmem:[#allocation6] sm:$0xff]  ;;  %v139_v4 = vld [vmem:[#allocation6 + $0x10] sm:$0xff]  ;;  %v140_v6 = vld [vmem:[#allocation6 + $0x18] sm:$0xff]  ;;  %vm354_vm1 = vcmask 1041409   ;;  %vm356_vm2 = vcmask 1042434   ;;  %vm358_vm3 = vcmask 1043459  }
  0x29   :  { %68 = vperm.xlu0 %874, %v66_v1   ;;  %v818_v5 = vpack.c.bf16 %v138_v3, %v137_v2  ;;  %v822_v7 = vpack.c.bf16 %v140_v6, %v139_v4  ;;  %v141_v8 = vld [vmem:[#allocation6 + $0x20] sm:$0xff]  ;;  %v142_v9 = vld [vmem:[#allocation6 + $0x28] sm:$0xff]  ;;  %v143_v11 = vld [vmem:[#allocation6 + $0x30] sm:$0xff]  ;;  %v1081_v27 = vshrl.u32 %v64_v26, 7  ;;  %v1083_v28 = vand.u32 127, %v64_v26 }
  0x2a   :  { %v826_v10 = vpack.c.bf16 %v142_v9, %v141_v8  ;;  %v144_v12 = vld [vmem:[#allocation6 + $0x38] sm:$0xff]  ;;  %v145_v14 = vld [vmem:[#allocation6 + $0x40] sm:$0xff]  ;;  %v146_v15 = vld [vmem:[#allocation6 + $0x48] sm:$0xff]  ;;  %vm360_vm4 = vcmask 1044484   ;;  %vm362_vm5 = vcmask 1045509   ;;  %vm364_vm6 = vcmask 1046534  }
  0x2b   :  { %819 = vmatprep.subr.bf16.mxu0 %v818_v5  ;;  %850 = vmatprep.subr.bf16.mxu1 %v818_v5  ;;  %v830_v13 = vpack.c.bf16 %v144_v12, %v143_v11  ;;  %v834_v16 = vpack.c.bf16 %v146_v15, %v145_v14  ;;  %v147_v17 = vld [vmem:[#allocation6 + $0x50] sm:$0xff]  ;;  %v148_v18 = vld [vmem:[#allocation6 + $0x58] sm:$0xff]  ;;  %v149_v20 = vld [vmem:[#allocation6 + $0x60] sm:$0xff]  ;;  %v1086_v29 = vsub.s32 1, %v1081_v27  ;;  %v1089_v30 = vsub.s32 0, %v1081_v27 }
  0x2c   :  { %821 = vmatpush3.bf16.msra.mxu0 %v818_v5  ;;  %858 = vmatpush3.bf16.msra.mxu1 %v818_v5  ;;  %v838_v19 = vpack.c.bf16 %v148_v18, %v147_v17  ;;  %v150_v21 = vld [vmem:[#allocation6 + $0x68] sm:$0xff]  ;;  %v151_v23 = vld [vmem:[#allocation6 + $0x70] sm:$0xff]  ;;  %v152_v24 = vld [vmem:[#allocation6 + $0x78] sm:$0xff]  ;;  %v1095_v36 = vsub.s32 2, %v1081_v27  ;;  %v1098_v37 = vsub.s32 4, %v1081_v27  ;;  %v1103_v40 = vsub.s32 3, %v1081_v27 }
  0x2d   :  { %823 = vmatprep.subr.bf16.mxu0 %v822_v7  ;;  %851 = vmatprep.subr.bf16.mxu1 %v822_v7  ;;  %v842_v22 = vpack.c.bf16 %v150_v21, %v149_v20  ;;  %v846_v25 = vpack.c.bf16 %v152_v24, %v151_v23  ;;  %v1106_v41 = vsub.s32 5, %v1081_v27  ;;  %v1111_v44 = vsub.s32 6, %v1081_v27  ;;  %v57_v48 = vld [vmem:[#allocation3 + $0x8] sm:$0xff]  ;;  %v56_v49 = vld [vmem:[#allocation3] sm:$0xff]  ;;  %v58_v54 = vld [vmem:[#allocation3 + $0x10] sm:$0xff] }
  0x2e   :  { %v1114_v45 = vsub.s32 7, %v1081_v27  ;;  %v60_v55 = vld [vmem:[#allocation3 + $0x20] sm:$0xff]  ;;  %v59_v60 = vld [vmem:[#allocation3 + $0x18] sm:$0xff]  ;;  %v61_v61 = vld [vmem:[#allocation3 + $0x28] sm:$0xff]  ;;  %vm366_vm7 = vcmask 1047559   ;;  %vm369_vm8 = vcmask 64512  }
  0x2f   :  { %v62_v2 = vld [vmem:[#allocation3 + $0x30] sm:$0xff]  ;;  %v63_v3 = vld [vmem:[#allocation3 + $0x38] sm:$0xff]  ;;  %v748_v8 = vld [vmem:[%s1261_s3] ss:$0 sm:$0xff] }
  0x30   :  { %825 = vmatpush3.bf16.msra.mxu0 %v822_v7  ;;  %859 = vmatpush3.bf16.msra.mxu1 %v822_v7  ;;  %v749_v20 = vld [vmem:[%s1262_s4] ss:$0 sm:$0xff] }
  0x31   :  { %827 = vmatprep.subr.bf16.mxu0 %v826_v10  ;;  %852 = vmatprep.subr.bf16.mxu1 %v826_v10 }
  0x34   :  { %829 = vmatpush3.bf16.msra.mxu0 %v826_v10  ;;  %860 = vmatpush3.bf16.msra.mxu1 %v826_v10 }
  0x35   :  { %831 = vmatprep.subr.bf16.mxu0 %v830_v13  ;;  %853 = vmatprep.subr.bf16.mxu1 %v830_v13 }
  0x38   :  { %833 = vmatpush3.bf16.msra.mxu0 %v830_v13  ;;  %861 = vmatpush3.bf16.msra.mxu1 %v830_v13 }
  0x39   :  { %835 = vmatprep.subr.bf16.mxu0 %v834_v16  ;;  %854 = vmatprep.subr.bf16.mxu1 %v834_v16 }
  0x3c   :  { %837 = vmatpush3.bf16.msra.mxu0 %v834_v16  ;;  %862 = vmatpush3.bf16.msra.mxu1 %v834_v16 }
  0x3d   :  { %839 = vmatprep.subr.bf16.mxu0 %v838_v19  ;;  %855 = vmatprep.subr.bf16.mxu1 %v838_v19 }
  0x40   :  { %841 = vmatpush3.bf16.msra.mxu0 %v838_v19  ;;  %863 = vmatpush3.bf16.msra.mxu1 %v838_v19 }
  0x41   :  { %843 = vmatprep.subr.bf16.mxu0 %v842_v22  ;;  %856 = vmatprep.subr.bf16.mxu1 %v842_v22 }
  0x44   :  { %845 = vmatpush3.bf16.msra.mxu0 %v842_v22  ;;  %864 = vmatpush3.bf16.msra.mxu1 %v842_v22 }
  0x45   :  { %847 = vmatprep.subr.bf16.mxu0 %v846_v25  ;;  %857 = vmatprep.subr.bf16.mxu1 %v846_v25 }
  0x48   :  { %849 = vmatpush3.bf16.msra.mxu0 %v846_v25  ;;  %865 = vmatpush3.bf16.msra.mxu1 %v846_v25 }
  0xa8   :  { %v69_v31 = vpop.permute.xlu0 %68 }
  0xa9   :  { %vm70_vm0 = vcmp.lt.s32.totalorder %v1083_v28, %v69_v31 }
  0xaa   :  { %v747_v33 = vsel %vm70_vm0, 1.0, %v1011_v32 }
  0xab   :  { %v83_v34 = vrot.slane %v747_v33, %v1086_v29  ;;  %v76_v35 = vrot.slane %v747_v33, %v1089_v30  ;;  %v90_v38 = vrot.slane %v747_v33, %v1095_v36  ;;  %v104_v39 = vrot.slane %v747_v33, %v1098_v37 }
  0xac   :  { %v97_v42 = vrot.slane %v747_v33, %v1103_v40  ;;  %v111_v43 = vrot.slane %v747_v33, %v1106_v41  ;;  %v118_v46 = vrot.slane %v747_v33, %v1111_v44  ;;  %v125_v47 = vrot.slane %v747_v33, %v1114_v45 }
  0xad   :  { %85 = vbcast.lane.b32.xlu1 %v83_v34, 256  ;;  %78 = vbcast.lane.b32.xlu0 %v76_v35, 256 }
  0xb1   :  { %92 = vbcast.lane.b32.xlu1 %v90_v38, 256  ;;  %106 = vbcast.lane.b32.xlu0 %v104_v39, 256 }
  0xb5   :  { %99 = vbcast.lane.b32.xlu1 %v97_v42, 256  ;;  %113 = vbcast.lane.b32.xlu0 %v111_v43, 256 }
  0xb9   :  { %120 = vbcast.lane.b32.xlu1 %v118_v46, 256  ;;  %127 = vbcast.lane.b32.xlu0 %v125_v47, 256 }
 0x11f   :  { %v86_v50 = vpop.permute.xlu1 %85  ;;  %v79_v51 = vpop.permute.xlu0 %78 }
 0x120   :  { %v1118_v52 = vmul.f32 %v86_v50, %v57_v48  ;;  %v1120_v53 = vmul.f32 %v79_v51, %v56_v49 }
 0x122   :  { %806 = vmatprep.mubr.f32.mxu0 %v1120_v53 }
 0x123   :  { %v93_v56 = vpop.permute.xlu1 %92  ;;  %v107_v57 = vpop.permute.xlu0 %106  ;;  %807 = vmatmul.mubr.f32.vlgmr.msra.gmra.mrb[0].mxu0 %v1118_v52 }
 0x124   :  { %v1124_v58 = vmul.f32 %v93_v56, %v58_v54  ;;  %v1126_v59 = vmul.f32 %v107_v57, %v60_v55  ;;  %v305_v55 = vstv %s1263_s5  ;;  %s1012_s5 = smov [#allocation9]  }
 0x125   :  { %s733_s30 = sshll.u32 %s1012_s5, 4  ;;  %s734_s30 = int_to_ptr.vmem [resolvable:$true] %s733_s30 }
 0x126   :  { %809 = vmatprep.mubr.f32.mxu0 %v1124_v58  ;;  %812 = vmatprep.mubr.f32.mxu1 %v1126_v59  ;;  %s954_s8 = scalar_lea.vmem %s734_s30, 128  ;;  %p959_p3 = scmp.lt.s32.totalorder %s734_s30, %s734_s30 }
 0x127   :  { %v100_v62 = vpop.permute.xlu1 %99  ;;  %v114_v63 = vpop.permute.xlu0 %113  ;;  %p955_p2 = scmp.ne.s32.totalorder %s734_s30, %s954_s8  ;;  %p960_p4 = scmp.lt.s32.totalorder %s954_s8, %s954_s8 }
 0x128   :  { %v1130_v0 = vmul.f32 %v100_v62, %v59_v60  ;;  %v1132_v1 = vmul.f32 %v114_v63, %v61_v61  ;;  %v1153_v60 = vsub.s32 %v1083_v28, %v1081_v27 }
 0x129   :  { %p961_p5 = por %p960_p4, %p959_p3 }
 0x12a   :  { %810 = vmatmul.mubr.f32.gmra.mrb[2].mxu0 %v1130_v0  ;;  %813 = vmatmul.mubr.f32.vlgmr.msra.gmra.mrb[0].mxu1 %v1132_v1 }
 0x12b   :  { %v121_v4 = vpop.permute.xlu1 %120  ;;  %v128_v5 = vpop.permute.xlu0 %127  ;;  %p962_p6 = pnand %p961_p5, %p955_p2 }
 0x12c   :  { %v1136_v6 = vmul.f32 %v121_v4, %v62_v2  ;;  %v1138_v7 = vmul.f32 %v128_v5, %v63_v3 }
 0x12e   :  { %815 = vmatprep.mubr.f32.mxu1 %v1136_v6 }
 0x12f   :  { %816 = vmatmul.mubr.f32.gmra.mrb[2].mxu1 %v1138_v7 }
 0x1f6   :  { %v808_v9 = vpop.f32.mrb[0].mxu0 }
 0x1f7   :  { %v232_v10 = vadd.f32 %v808_v9, %v748_v8  ;;  %v226_v11 = vpop.f32.mrb[1].mxu0 }
 0x1f8   :  { %v227_v14 = vadd.f32 %v748_v8, %v226_v11 }
 0x1f9   :  { %876 = vtanh.f32 %v232_v10 }
 0x1fd   :  { %v811_v12 = vpop.f32.mrb[2].mxu0  ;;  %v814_v13 = vpop.f32.mrb[0].mxu1 }
 0x1fe   :  { %v252_v15 = vadd.f32 %v814_v13, %v748_v8  ;;  %v236_v16 = vpop.f32.mrb[3].mxu0  ;;  %v246_v17 = vpop.f32.mrb[1].mxu1  ;;  %v242_v23 = vadd.f32 %v811_v12, %v748_v8 }
 0x1ff   :  { %v247_v18 = vadd.f32 %v748_v8, %v246_v17  ;;  %v237_v19 = vadd.f32 %v748_v8, %v236_v16 }
 0x200   :  { %878 = vtanh.f32 %v252_v15 }
 0x201   :  { %880 = vtanh.f32 %v227_v14 }
 0x202   :  { %v817_v21 = vpop.f32.mrb[2].mxu1  ;;  %882 = vtanh.f32 %v247_v18 }
 0x203   :  { %v877_v22 = vpop.eup %876  ;;  %v256_v24 = vpop.f32.mrb[3].mxu1  ;;  %884 = vtanh.f32 %v237_v19  ;;  %v262_v31 = vadd.f32 %v817_v21, %v748_v8 }
 0x204   :  { %v281_v25 = vmul.f32 %v877_v22, %v749_v20  ;;  %v257_v26 = vadd.f32 %v748_v8, %v256_v24  ;;  %886 = vtanh.f32 %v242_v23 }
 0x206   :  { %290 = vadd.xlane.f32.xlu0 %v281_v25  ;;  %888 = vtanh.f32 %v257_v26 }
 0x207   :  { %890 = vtanh.f32 %v262_v31 }
 0x20a   :  { %v879_v32 = vpop.eup %878 }
 0x20b   :  { %v881_v33 = vpop.eup %880  ;;  %v285_v34 = vmul.f32 %v879_v32, %v749_v20 }
 0x20c   :  { %v883_v35 = vpop.eup %882  ;;  %v280_v42 = vmul.f32 %v881_v33, %v749_v20 }
 0x20d   :  { %298 = vadd.xlane.f32.xlu1 %v285_v34  ;;  %v284_v38 = vmul.f32 %v883_v35, %v749_v20  ;;  %v885_v39 = vpop.eup %884 }
 0x20e   :  { %v887_v43 = vpop.eup %886  ;;  %v282_v46 = vmul.f32 %v885_v39, %v749_v20 }
 0x20f   :  { %296 = vadd.xlane.f32.xlu0 %v284_v38  ;;  %v283_v48 = vmul.f32 %v887_v43, %v749_v20 }
 0x210   :  { %v889_v47 = vpop.eup %888 }
 0x211   :  { %288 = vadd.xlane.f32.xlu1 %v280_v42  ;;  %v891_v49 = vpop.eup %890  ;;  %v286_v50 = vmul.f32 %v889_v47, %v749_v20 }
 0x212   :  { %v287_v51 = vmul.f32 %v891_v49, %v749_v20 }
 0x213   :  { %292 = vadd.xlane.f32.xlu0 %v282_v46 }
 0x215   :  { %294 = vadd.xlane.f32.xlu1 %v283_v48 }
 0x217   :  { %300 = vadd.xlane.f32.xlu0 %v286_v50 }
 0x219   :  { %302 = vadd.xlane.f32.xlu1 %v287_v51 }
 0x293   :  { %v291_v54 = vpop.xlane.xlu0 %290 }
 0x294   :  { %v307_v61 = vadd.f32 %v305_v55, %v291_v54 }
 0x296   :  { %v329_v3 = vrot.slane %v307_v61, %v1153_v60 }
 0x29a   :  { %v299_v56 = vpop.xlane.xlu1 %298 }
 0x29b   :  { %v311_v10 = vadd.f32 %v305_v55, %v299_v56 }
 0x29c   :  { %v297_v57 = vpop.xlane.xlu0 %296 }
 0x29d   :  { %v310_v8 = vadd.f32 %v305_v55, %v297_v57  ;;  %v345_v18 = vrot.slane %v311_v10, %v1153_v60 }
 0x29e   :  { %v289_v62 = vpop.xlane.xlu1 %288 }
 0x29f   :  { %v306_v63 = vadd.f32 %v305_v55, %v289_v62  ;;  %v341_v15 = vrot.slane %v310_v8, %v1153_v60 }
 0x2a0   :  { %v293_v2 = vpop.xlane.xlu0 %292 }
 0x2a1   :  { %v325_v4 = vrot.slane %v306_v63, %v1153_v60  ;;  %v308_v5 = vadd.f32 %v305_v55, %v293_v2 }
 0x2a2   :  { %v295_v9 = vpop.xlane.xlu1 %294 }
 0x2a3   :  { %v355_v11 = vsel %vm354_vm1, %v329_v3, %v325_v4  ;;  %v333_v12 = vrot.slane %v308_v5, %v1153_v60  ;;  %v309_v27 = vadd.f32 %v305_v55, %v295_v9 }
 0x2a4   :  { %v301_v28 = vpop.xlane.xlu0 %300 }
 0x2a5   :  { %v337_v13 = vrot.slane %v309_v27, %v1153_v60  ;;  %v312_v14 = vadd.f32 %v305_v55, %v301_v28  ;;  %v357_v16 = vsel %vm356_vm2, %v333_v12, %v355_v11 }
 0x2a6   :  { %v303_v17 = vpop.xlane.xlu1 %302 }
 0x2a7   :  { %v359_v19 = vsel %vm358_vm3, %v337_v13, %v357_v16  ;;  %v313_v20 = vadd.f32 %v305_v55, %v303_v17  ;;  %v349_v21 = vrot.slane %v312_v14, %v1153_v60 }
 0x2a8   :  { %v361_v22 = vsel %vm360_vm4, %v341_v15, %v359_v19 }
 0x2a9   :  { %v353_v23 = vrot.slane %v313_v20, %v1153_v60  ;;  %v363_v24 = vsel %vm362_vm5, %v345_v18, %v361_v22 }
 0x2aa   :  { %v365_v25 = vsel %vm364_vm6, %v349_v21, %v363_v24 }
 0x2ab   :  { %v367_v26 = vsel %vm366_vm7, %v353_v23, %v365_v25 }
 0x2ac   :  { %v370_v31 = vsel %vm369_vm8, %v367_v26, -inf }
 0x2ad   :  { %371 = vmax.xlane.f32.xlu0 %v370_v31 }
 0x33a   :  { %v372_v32 = vpop.xlane.xlu0 %371 }
 0x33b   :  { %v377_v33 = vrot.slane %v372_v32, %v1089_v30  ;;  %v381_v34 = vrot.slane %v372_v32, %v1086_v29  ;;  %v385_v35 = vrot.slane %v372_v32, %v1095_v36  ;;  %v393_v38 = vrot.slane %v372_v32, %v1098_v37 }
 0x33c   :  { %v389_v39 = vrot.slane %v372_v32, %v1103_v40  ;;  %v401_v47 = vrot.slane %v372_v32, %v1111_v44  ;;  %v397_v51 = vrot.slane %v372_v32, %v1106_v41  ;;  %v405_v62 = vrot.slane %v372_v32, %v1114_v45 }
 0x33d   :  { %v414_v42 = vsub.f32 %v306_v63, %v377_v33  ;;  %v415_v43 = vsub.f32 %v307_v61, %v381_v34  ;;  %v416_v46 = vsub.f32 %v308_v5, %v385_v35  ;;  %v418_v48 = vsub.f32 %v310_v8, %v393_v38 }
 0x33e   :  { %v417_v54 = vsub.f32 %v309_v27, %v389_v39  ;;  %v420_v56 = vsub.f32 %v312_v14, %v401_v47  ;;  %v419_v2 = vsub.f32 %v311_v10, %v397_v51  ;;  %v421_v3 = vsub.f32 %v313_v20, %v405_v62 }
 0x33f   :  { %v422_v49 = vmul.f32 1.442695, %v414_v42  ;;  %v424_v50 = vmul.f32 1.442695, %v415_v43  ;;  %v426_v55 = vmul.f32 1.442695, %v416_v46 }
 0x340   :  { %v430_v57 = vmul.f32 1.442695, %v418_v48  ;;  %v428_v63 = vmul.f32 1.442695, %v417_v54  ;;  %v434_v61 = vmul.f32 1.442695, %v420_v56 }
 0x341   :  { %892 = vpow2.f32 %v422_v49  ;;  %v432_v4 = vmul.f32 1.442695, %v419_v2  ;;  %v436_v9 = vmul.f32 1.442695, %v421_v3 }
 0x342   :  { %894 = vpow2.f32 %v424_v50 }
 0x343   :  { %896 = vpow2.f32 %v426_v55 }
 0x344   :  { %898 = vpow2.f32 %v430_v57 }
 0x345   :  { %900 = vpow2.f32 %v428_v63 }
 0x346   :  { %902 = vpow2.f32 %v434_v61 }
 0x347   :  { %904 = vpow2.f32 %v432_v4 }
 0x348   :  { %906 = vpow2.f32 %v436_v9 }
 0x34b   :  { %v893_v5 = vpop.eup %892 }
 0x34c   :  { %v895_v8 = vpop.eup %894  ;;  %447 = vperm.xlu1 %875, %v893_v5  }
 0x34d   :  { %450 = vperm.xlu0 %874, %v895_v8   ;;  %v897_v11 = vpop.eup %896 }
 0x34e   :  { %v899_v12 = vpop.eup %898 }
 0x34f   :  { %v901_v10 = vpop.eup %900 }
 0x350   :  { %453 = vperm.xlu1 %875, %v897_v11   ;;  %v903_v27 = vpop.eup %902 }
 0x351   :  { %459 = vperm.xlu0 %874, %v899_v12   ;;  %v905_v28 = vpop.eup %904 }
 0x352   :  { %v907_v13 = vpop.eup %906 }
 0x354   :  { %456 = vperm.xlu1 %875, %v901_v10  }
 0x355   :  { %465 = vperm.xlu0 %874, %v903_v27  }
 0x358   :  { %462 = vperm.xlu1 %875, %v905_v28  }
 0x35c   :  { %468 = vperm.xlu1 %875, %v907_v13  }
 0x3cb   :  { %v448_v14 = vpop.permute.xlu1 %447 }
 0x3cc   :  { %v451_v15 = vpop.permute.xlu0 %450  ;;  %v473_v18 = vrot.slane %v448_v14, %v1153_v60 }
 0x3cd   :  { %v477_v17 = vrot.slane %v451_v15, %v1153_v60 }
 0x3cf   :  { %v454_v16 = vpop.permute.xlu1 %453  ;;  %v502_v22 = vsel %vm354_vm1, %v477_v17, %v473_v18 }
 0x3d0   :  { %v481_v19 = vrot.slane %v454_v16, %v1153_v60  ;;  %v460_v20 = vpop.permute.xlu0 %459 }
 0x3d1   :  { %v489_v26 = vrot.slane %v460_v20, %v1153_v60 }
 0x3d2   :  { %v503_v24 = vsel %vm356_vm2, %v481_v19, %v502_v22 }
 0x3d3   :  { %v457_v21 = vpop.permute.xlu1 %456 }
 0x3d4   :  { %v485_v23 = vrot.slane %v457_v21, %v1153_v60  ;;  %v466_v32 = vpop.permute.xlu0 %465 }
 0x3d5   :  { %v497_v38 = vrot.slane %v466_v32, %v1153_v60 }
 0x3d6   :  { %v504_v25 = vsel %vm358_vm3, %v485_v23, %v503_v24 }
 0x3d7   :  { %v463_v31 = vpop.permute.xlu1 %462  ;;  %v505_v34 = vsel %vm360_vm4, %v489_v26, %v504_v25 }
 0x3d8   :  { %v493_v33 = vrot.slane %v463_v31, %v1153_v60 }
 0x3da   :  { %v506_v35 = vsel %vm362_vm5, %v493_v33, %v505_v34 }
 0x3db   :  { %v469_v39 = vpop.permute.xlu1 %468  ;;  %v507_v43 = vsel %vm364_vm6, %v497_v38, %v506_v35 }
 0x3dc   :  { %v501_v42 = vrot.slane %v469_v39, %v1153_v60 }
 0x3de   :  { %v508_v46 = vsel %vm366_vm7, %v501_v42, %v507_v43 }
 0x3df   :  { %v510_v47 = vsel %vm369_vm8, %v508_v46, 0.0 }
 0x3e0   :  { %511 = vadd.xlane.f32.xlu0 %v510_v47 }
 0x46d   :  { %v512_v48 = vpop.xlane.xlu0 %511 }
 0x46e   :  { %908 = vrcp.f32 %v512_v48 }
 0x478   :  { %v909_v49 = vpop.eup %908 }
 0x479   :  { %v518_v50 = vrot.slane %v909_v49, %v1089_v30  ;;  %v522_v54 = vrot.slane %v909_v49, %v1086_v29  ;;  %v526_v56 = vrot.slane %v909_v49, %v1095_v36  ;;  %v530_v62 = vrot.slane %v909_v49, %v1103_v40 }
 0x47a   :  { %v534_v63 = vrot.slane %v909_v49, %v1098_v37  ;;  %v538_v3 = vrot.slane %v909_v49, %v1106_v41  ;;  %v542_v29 = vrot.slane %v909_v49, %v1111_v44  ;;  %v546_v36 = vrot.slane %v909_v49, %v1114_v45 }
 0x47b   :  { %v555_v51 = vmul.f32 %v893_v5, %v518_v50  ;;  %v556_v55 = vmul.f32 %v895_v8, %v522_v54  ;;  %v557_v57 = vmul.f32 %v897_v11, %v526_v56  ;;  %v558_v2 = vmul.f32 %v901_v10, %v530_v62 }
 0x47c   :  { %v559_v61 = vmul.f32 %v899_v12, %v534_v63  ;;  %v560_v30 = vmul.f32 %v905_v28, %v538_v3  ;;  %v561_v4 = vmul.f32 %v903_v27, %v542_v29  ;;  %v562_v5 = vmul.f32 %v907_v13, %v546_v36 }
 0x47d   :  { %565 = vperm.xlu1 %875, %v555_v51  }
 0x481   :  { %570 = vperm.xlu1 %875, %v556_v55  }
 0x485   :  { %575 = vperm.xlu1 %875, %v557_v57  }
 0x489   :  { %580 = vperm.xlu1 %875, %v558_v2  }
 0x48d   :  { %585 = vperm.xlu1 %875, %v559_v61  }
 0x491   :  { %590 = vperm.xlu1 %875, %v560_v30  }
 0x495   :  { %595 = vperm.xlu1 %875, %v561_v4  }
 0x499   :  { %600 = vperm.xlu1 %875, %v562_v5  }
 0x4fc   :  { %v566_v40 = vpop.permute.xlu1 %565 }
 0x4fd   :  { %v603_v11 = vmul.f32 %v566_v40, %v1120_v53  ;;  %v679_v24 = vrot.slane %v566_v40, %v1153_v60 }
 0x4ff   :  { %v611_v28 = vrot.slane %v603_v11, 4 }
 0x500   :  { %v571_v8 = vpop.permute.xlu1 %570 }
 0x501   :  { %v604_v9 = vmul.f32 %v571_v8, %v1118_v52  ;;  %v612_v16 = vadd.f32 %v611_v28, %v603_v11  ;;  %v683_v53 = vrot.slane %v571_v8, %v1153_v60 }
 0x503   :  { %v617_v12 = vrot.slane %v604_v9, 4  ;;  %v613_v22 = vrot.slane %v612_v16, 2  ;;  %v708_v34 = vsel %vm354_vm1, %v683_v53, %v679_v24 }
 0x504   :  { %v576_v37 = vpop.permute.xlu1 %575 }
 0x505   :  { %v605_v41 = vmul.f32 %v576_v37, %v1124_v58  ;;  %v618_v45 = vadd.f32 %v617_v12, %v604_v9  ;;  %v687_v23 = vrot.slane %v576_v37, %v1153_v60  ;;  %v614_v39 = vadd.f32 %v613_v22, %v612_v16 }
 0x507   :  { %v623_v27 = vrot.slane %v605_v41, 4  ;;  %v619_v19 = vrot.slane %v618_v45, 2  ;;  %v709_v43 = vsel %vm356_vm2, %v687_v23, %v708_v34  ;;  %v615_v63 = vrot.slane %v614_v39, 1 }
 0x508   :  { %v581_v10 = vpop.permute.xlu1 %580 }
 0x509   :  { %v606_v44 = vmul.f32 %v581_v10, %v1130_v0  ;;  %v624_v17 = vadd.f32 %v623_v27, %v605_v41  ;;  %v691_v31 = vrot.slane %v581_v10, %v1153_v60 }
 0x50b   :  { %v629_v14 = vrot.slane %v606_v44, 4  ;;  %v625_v0 = vrot.slane %v624_v17, 2  ;;  %v710_v54 = vsel %vm358_vm3, %v691_v31, %v709_v43 }
 0x50c   :  { %v586_v15 = vpop.permute.xlu1 %585 }
 0x50d   :  { %v607_v13 = vmul.f32 %v586_v15, %v1126_v59  ;;  %v630_v18 = vadd.f32 %v629_v14, %v606_v44  ;;  %v620_v59 = vadd.f32 %v619_v19, %v618_v45  ;;  %v695_v35 = vrot.slane %v586_v15, %v1153_v60 }
 0x50e   :  { %v626_v42 = vadd.f32 %v625_v0, %v624_v17 }
 0x50f   :  { %v635_v52 = vrot.slane %v607_v13, 4  ;;  %v631_v25 = vrot.slane %v630_v18, 2  ;;  %v621_v51 = vrot.slane %v620_v59, 1 }
 0x510   :  { %v591_v20 = vpop.permute.xlu1 %590  ;;  %v627_v61 = vrot.slane %v626_v42, 1 }
 0x511   :  { %v636_v58 = vadd.f32 %v635_v52, %v607_v13  ;;  %v608_v21 = vmul.f32 %v591_v20, %v1132_v1  ;;  %v699_v46 = vrot.slane %v591_v20, %v1153_v60  ;;  %v632_v47 = vadd.f32 %v631_v25, %v630_v18 }
 0x512   :  { %v622_v9 = vadd.f32 %v621_v51, %v620_v59 }
 0x513   :  { %v641_v26 = vrot.slane %v608_v21, 4  ;;  %v637_v32 = vrot.slane %v636_v58, 2  ;;  %v633_v29 = vrot.slane %v632_v47, 1 }
 0x514   :  { %v596_v33 = vpop.permute.xlu1 %595 }
 0x515   :  { %v642_v38 = vadd.f32 %v641_v26, %v608_v21  ;;  %v609_v1 = vmul.f32 %v596_v33, %v1136_v6  ;;  %v703_v50 = vrot.slane %v596_v33, %v1153_v60  ;;  %v638_v55 = vadd.f32 %v637_v32, %v636_v58 }
 0x516   :  { %v711_v6 = vsel %vm360_vm4, %v695_v35, %v710_v54 }
 0x517   :  { %v643_v48 = vrot.slane %v642_v38, 2  ;;  %v647_v49 = vrot.slane %v609_v1, 4  ;;  %v712_v3 = vsel %vm362_vm5, %v699_v46, %v711_v6  ;;  %v639_v40 = vrot.slane %v638_v55, 1 }
 0x518   :  { %v601_v56 = vpop.permute.xlu1 %600  ;;  %v713_v5 = vsel %vm364_vm6, %v703_v50, %v712_v3 }
 0x519   :  { %v644_v57 = vadd.f32 %v643_v48, %v642_v38  ;;  %v648_v62 = vadd.f32 %v647_v49, %v609_v1  ;;  %v610_v2 = vmul.f32 %v601_v56, %v1138_v7  ;;  %v707_v30 = vrot.slane %v601_v56, %v1153_v60 }
 0x51a   :  { %v628_v7 = vadd.f32 %v627_v61, %v626_v42 }
 0x51b   :  { %v649_v4 = vrot.slane %v648_v62, 2  ;;  %v653_v36 = vrot.slane %v610_v2, 4  ;;  %v714_v8 = vsel %vm366_vm7, %v707_v30, %v713_v5  ;;  %v645_v37 = vrot.slane %v644_v57, 1 }
 0x51c   :  { %716 = vst.msk [vmem:[#allocation9] sm:$0xff] %vm369_vm8, %v714_v8 }
 0x51d   :  { %v650_v11 = vadd.f32 %v649_v4, %v648_v62  ;;  %v654_v41 = vadd.f32 %v653_v36, %v610_v2 }
 0x51e   :  { %965 = shalt.err (!%p962_p6)
}
 0x51f   :  { %s966_s11 = scalar_lea.hbm %s1265_s7, 128 }
 0x520   :  { %p967_p7 = scmp.ne.s32.totalorder %s1265_s7, %s966_s11  ;;  %p970_p8 = scmp.lt.u32.totalorder %s966_s11, %s1265_s7 }
 0x522   :  { %p972_p9 = pnand %p970_p8, %p967_p7 }
 0x524   :  { %975 = shalt.err (!%p972_p9)
}
 0x525   :  { %736 = dma.vmem_to_hbm [thread:$0]  %s734_s30, 128, %s1265_s7, [#allocation10]   ;;  %v616_v60 = vadd.f32 %v615_v63, %v614_v39  ;;  %v634_v12 = vadd.f32 %v633_v29, %v632_v47  ;;  %v651_v10 = vrot.slane %v650_v11, 1  ;;  %v655_v44 = vrot.slane %v654_v41, 2 }
 0x526   :  { %v640_v28 = vadd.f32 %v639_v40, %v638_v55  ;;  %v646_v14 = vadd.f32 %v645_v37, %v644_v57  ;;  %s1013_s18 = smov [#allocation8]  }
 0x527   :  { %v667_v27 = vsel %vm354_vm1, %v622_v9, %v616_v60  ;;  %v656_v45 = vadd.f32 %v655_v44, %v654_v41  ;;  %v652_v13 = vadd.f32 %v651_v10, %v650_v11  ;;  %s723_s19 = sshll.u32 %s1013_s18, 4  ;;  %s724_s19 = int_to_ptr.vmem [resolvable:$true] %s723_s19 }
 0x528   :  { %v668_v15 = vsel %vm356_vm2, %v628_v7, %v667_v27  ;;  %s976_s7 = scalar_lea.vmem %s724_s19, 128  ;;  %p981_p11 = scmp.lt.s32.totalorder %s724_s19, %s724_s19 }
 0x529   :  { %v657_v16 = vrot.slane %v656_v45, 1  ;;  %v669_v17 = vsel %vm358_vm3, %v634_v12, %v668_v15  ;;  %p977_p10 = scmp.ne.s32.totalorder %s724_s19, %s976_s7  ;;  %p982_p12 = scmp.lt.s32.totalorder %s976_s7, %s976_s7 }
 0x52a   :  { %v670_v18 = vsel %vm360_vm4, %v640_v28, %v669_v17 }
 0x52b   :  { %v658_v52 = vadd.f32 %v657_v16, %v656_v45  ;;  %v671_v19 = vsel %vm362_vm5, %v646_v14, %v670_v18  ;;  %p983_p13 = por %p982_p12, %p981_p11 }
 0x52c   :  { %v672_v20 = vsel %vm364_vm6, %v652_v13, %v671_v19 }
 0x52d   :  { %v673_v53 = vsel %vm366_vm7, %v658_v52, %v672_v20  ;;  %p984_p0 = pnand %p983_p13, %p977_p10 }
 0x52e   :  { %675 = vst [vmem:[#allocation8] sm:$0xff] %v673_v53 }
 0x52f   :  { %987 = shalt.err (!%p984_p0)
}
 0x530   :  { %s988_s22 = scalar_lea.hbm %s1264_s6, 128 }
 0x531   :  { %p989_p1 = scmp.ne.s32.totalorder %s1264_s6, %s988_s22  ;;  %p992_p2 = scmp.lt.u32.totalorder %s988_s22, %s1264_s6 }
 0x533   :  { %p994_p3 = pnand %p992_p2, %p989_p1 }
 0x535   :  { %997 = shalt.err (!%p994_p3)
}
 0x536   :  { %726 = dma.vmem_to_hbm [thread:$0]  %s724_s19, 128, %s1264_s6, [#allocation5]  }
 0x537   :  { %1002 = dma.done.wait [#allocation5], 128  }
 0x538   :  { %1003 = vsyncadd [#allocation5], 4294967168 }
 0x539   :  { %1004 = dma.done.wait [#allocation10], 128  }
 0x53a   :  { %1005 = vsyncadd [#allocation10], 4294967168 }
 0x53b   :  { %743 = vsyncpa [#allocation4], 1 }
 0x53c   :  { %744 = vsyncpa [#allocation7], 1 }
 0x53d   :  { %745 = vsyncpa [#allocation5], 1 }
 0x53e   :  { %746 = vsyncpa [#allocation10], 1 }

</bundles_post_ra>
